<compile_context>
chip_gen: v5e
topology: v5e:2x2
jax: 0.10.0
libtpu: 0.0.40
codegen_flags: <defaults>
</compile_context>

<pallas_src>
import functools

import jax
import jax.numpy as jnp
from jax.experimental import pallas as pl
from jax.experimental.pallas import tpu as pltpu


def _nonlocal_attn_kernel(xq_ref, wt_ref, bt_ref, phit_ref, g_ref, o_ref,
                          m_sc, l_sc, acc_sc, theta_sc,
                          *, tk, kv_resident, compute_dtype):
    """One (batch, query-tile, key-tile) grid step.

    xq_ref:   (1, C_in, tq)          query tile of x (channels on sublane, HW on lanes)
    wt_ref:   (c_pad, C_in)          theta 1x1-conv weight (zero-padded rows)
    bt_ref:   (c_pad, 1)             theta bias
    phit_ref: (1, HW|tk, c_pad)      precomputed phi, keys on sublanes (pre-transposed)
    g_ref:    (1, c_pad, HW|tk)      precomputed g, channels on sublanes
    o_ref:    (1, c_pad, tq)         lane-dense output tile
    scratch:  m_sc/l_sc (1, tq) f32, acc_sc (c_pad, tq) f32, theta_sc (c_pad, tq)
    """
    ki = pl.program_id(2)

    # Per-query-tile init: softmax stats, accumulator, and the theta projection
    # (hoisted out of the key loop -> computed once, reused for all n_k key steps).
    @pl.when(ki == 0)
    def _():
        m_sc[...] = jnp.full_like(m_sc, -jnp.inf)
        l_sc[...] = jnp.zeros_like(l_sc)
        acc_sc[...] = jnp.zeros_like(acc_sc)
        th = jnp.dot(wt_ref[...], xq_ref[0],
                     preferred_element_type=jnp.float32) + bt_ref[...]
        theta_sc[...] = th.astype(theta_sc.dtype)

    # Current key/value tile.  With resident KV the whole per-batch phi/g lives in VMEM
    # and we slice the key chunk here; otherwise the BlockSpec already delivers a tile.
    if kv_resident:
        off = pl.multiple_of(ki * tk, tk)
    else:
        off = 0
    phi_t = phit_ref[0, pl.ds(off, tk), :]     # (tk, c_pad)
    g = g_ref[0, :, pl.ds(off, tk)]            # (c_pad, tk)

    theta = theta_sc[...]                      # (c_pad, tq)

    # scores s[k, q] = sum_c phi[c, k] * theta[c, q]   (keys on sublanes, standard MXU
    # orientation: (tk, c_pad) @ (c_pad, tq) -> (tk, tq), f32 accumulation).
    s = jnp.dot(phi_t, theta, preferred_element_type=jnp.float32)

    # Online softmax over the key (sublane) axis; running stats are lane-oriented (1, tq).
    m_prev = m_sc[...]
    m_new = jnp.maximum(m_prev, jnp.max(s, axis=0, keepdims=True))   # (1, tq)
    alpha = jnp.exp(m_prev - m_new)                                  # (1, tq)
    p = jnp.exp(s - m_new)                                           # (tk, tq) f32

    l_sc[...] = alpha * l_sc[...] + jnp.sum(p, axis=0, keepdims=True)
    # Larger tk (default up to 512) keeps the number of full-accumulator rescales low.
    acc_sc[...] = alpha * acc_sc[...] + jnp.dot(
        g, p.astype(compute_dtype), preferred_element_type=jnp.float32)   # (c_pad, tq)
    m_sc[...] = m_new

    @pl.when(ki == pl.num_programs(2) - 1)
    def _():
        # Exact normalization (once per query tile -> negligible cost) for tight parity
        # with the PyTorch softmax.
        o_ref[0] = (acc_sc[...] / l_sc[...]).astype(o_ref.dtype)


def _round_up(x, m):
    return (x + m - 1) // m * m


def _default_vmem_limit_bytes():
    try:
        kind = jax.devices()[0].device_kind.lower()
    except Exception:  # no devices / interpret harness
        kind = ""
    if "v7" in kind:
        return 48 * 1024 * 1024      # headroom under v7x's 64 MiB physical VMEM
    return 100 * 1024 * 1024         # v5e / v6e have 128 MiB physical VMEM


def _pick_tile(hw, cap):
    for cand in (512, 256, 128):
        if cand <= cap and hw % cand == 0:
            return cand
    return hw                         # full-extent fallback (block == array dim)


def non_local_block_2d(x_nchw, w_theta, b_theta, w_phi, b_phi, w_g, b_g, *,
                       tq=None, tk=None, compute_dtype=jnp.float32,
                       vmem_limit_bytes=None):
    """Forward of NonLocalBlock2D with only_res=True, sub_sample=False.

    x_nchw:            (B, C_in, H, W) float32
    w_theta/w_phi/w_g: (C_inter, C_in) float32  (PyTorch 1x1-conv weight, squeezed)
    b_theta/b_phi/b_g: (C_inter,) float32
    compute_dtype:     operand dtype for the MXU matmuls and the precomputed phi/g
                       tensors.  Use jnp.bfloat16 on v6e/v7x for ~2x MXU throughput and
                       half the KV VMEM/HBM traffic (accumulation stays f32).  Default
                       f32 keeps strict numerical parity with the f32 PyTorch module.
    Returns z: (B, C_inter, H, W)
    """
    B, C_in, H, W = x_nchw.shape
    HW = H * W
    C_i = w_theta.shape[0]
    # Pad inter-channels to a multiple of 8 so channel-on-sublane blocks sit on native
    # vreg sublane boundaries.  Real configs should use C_i that is a multiple of
    # 128 (v5e) / 256 (v6e, v7x) for full MXU utilization.
    c_pad = _round_up(max(C_i, 1), 8)

    if vmem_limit_bytes is None:
        vmem_limit_bytes = _default_vmem_limit_bytes()

    tq = tq if tq is not None else _pick_tile(HW, 512)
    tk = tk if tk is not None else _pick_tile(HW, 512)
    # TODO(synk): pad + mask the key axis (-inf before the online softmax) to support
    # large HW not divisible by a 128-multiple tile.
    assert HW % tq == 0 and HW % tk == 0, (HW, tq, tk)
    n_q = HW // tq
    n_k = HW // tk

    # Channels-on-sublane layout for the query stream: pure reshape, no HBM transpose.
    x_flat = x_nchw.reshape(B, C_in, HW)

    def pad_rows(w, b):
        wp = jnp.zeros((c_pad, C_in), w.dtype).at[:C_i, :].set(w)
        bp = jnp.zeros((c_pad,), b.dtype).at[:C_i].set(b)
        return wp, bp

    wt_p, bt_p = pad_rows(w_theta, b_theta)
    wphi_p, bphi_p = pad_rows(w_phi, b_phi)
    wg_p, bg_p = pad_rows(w_g, b_g)

    # Prolog: phi and g 1x1-conv projections computed once per element (instead of once
    # per (query-tile, key-tile) pair inside the kernel), biases folded in.  phi is laid
    # out pre-transposed (keys on rows) so the in-kernel score matmul needs no transpose.
    phi_t = (jnp.einsum("oc,bcn->bno", wphi_p, x_flat)
             + bphi_p[None, None, :]).astype(compute_dtype)      # (B, HW, c_pad)
    g_x = (jnp.einsum("oc,bcn->bon", wg_p, x_flat)
           + bg_p[None, :, None]).astype(compute_dtype)          # (B, c_pad, HW)

    # KV residency: keep the whole per-batch phi/g in VMEM (one HBM read per batch
    # instead of one per query tile) when it fits under the scoped budget (x2 for the
    # pipeline's double buffering across batches).
    kv_bytes = 2 * c_pad * HW * jnp.dtype(compute_dtype).itemsize
    kv_resident = 2 * kv_bytes <= vmem_limit_bytes // 3

    if kv_resident:
        phi_spec = pl.BlockSpec((1, HW, c_pad), lambda b, qi, ki: (b, 0, 0))
        g_spec = pl.BlockSpec((1, c_pad, HW), lambda b, qi, ki: (b, 0, 0))
    else:
        # Streamed key tiles; 3-deep buffering hides the KV DMA on low-BW parts (v5e).
        phi_spec = pl.BlockSpec((1, tk, c_pad), lambda b, qi, ki: (b, ki, 0),
                                pipeline_mode=pl.Buffered(3))
        g_spec = pl.BlockSpec((1, c_pad, tk), lambda b, qi, ki: (b, 0, ki),
                              pipeline_mode=pl.Buffered(3))

    kern = functools.partial(_nonlocal_attn_kernel, tk=tk,
                             kv_resident=kv_resident, compute_dtype=compute_dtype)

    y = pl.pallas_call(
        kern,
        out_shape=jax.ShapeDtypeStruct((B, c_pad, HW), x_nchw.dtype),
        grid_spec=pltpu.PrefetchScalarGridSpec(
            num_scalar_prefetch=0,
            grid=(B, n_q, n_k),
            in_specs=[
                pl.BlockSpec((1, C_in, tq), lambda b, qi, ki: (b, 0, qi)),  # x query tile
                pl.BlockSpec((c_pad, C_in), lambda b, qi, ki: (0, 0)),      # w_theta
                pl.BlockSpec((c_pad, 1), lambda b, qi, ki: (0, 0)),         # b_theta
                phi_spec,                                                   # phi (keys x C)
                g_spec,                                                     # g   (C x keys)
            ],
            out_specs=pl.BlockSpec((1, c_pad, tq), lambda b, qi, ki: (b, 0, qi)),
            scratch_shapes=[
                pltpu.VMEM((1, tq), jnp.float32),        # running max
                pltpu.VMEM((1, tq), jnp.float32),        # running denom
                pltpu.VMEM((c_pad, tq), jnp.float32),    # output accumulator
                pltpu.VMEM((c_pad, tq), compute_dtype),  # hoisted theta projection
            ],
        ),
        compiler_params=pltpu.CompilerParams(
            dimension_semantics=("parallel", "parallel", "arbitrary"),
            vmem_limit_bytes=vmem_limit_bytes,
        ),
    )(x_flat, wt_p, bt_p.reshape(c_pad, 1), phi_t, g_x)

    # Lane-dense (B, c_pad, HW) output: drop the padded channels and reshape (no transpose).
    return y[:, :C_i, :].reshape(B, C_i, H, W)


def _reference(x_nchw, w_theta, b_theta, w_phi, b_phi, w_g, b_g):
    """Pure-JAX reference mirroring the PyTorch forward (only_res=True)."""
    B, C_in, H, W = x_nchw.shape
    HW = H * W
    x_flat = x_nchw.reshape(B, C_in, HW)                                 # (B, C_in, HW)
    theta_x = jnp.einsum("oc,bcn->bno", w_theta, x_flat) + b_theta       # (B, HW, C_i)
    phi_x = jnp.einsum("oc,bcn->bon", w_phi, x_flat) + b_phi[:, None]    # (B, C_i, HW)
    g_x = jnp.einsum("oc,bcn->bno", w_g, x_flat) + b_g                   # (B, HW, C_i)
    f = jnp.einsum("bqo,bok->bqk", theta_x, phi_x)                       # (B, HW, HW)
    f_div_c = jax.nn.softmax(f, axis=-1)
    y = jnp.einsum("bqk,bko->bqo", f_div_c, g_x)                         # (B, HW, C_i)
    return jnp.transpose(y, (0, 2, 1)).reshape(B, -1, H, W)


if __name__ == "__main__":
    # Module config: in_channels=4 -> inter_channels=2 (default in_channels // 2)
    B, C_in, H, W = 2, 4, 16, 16
    C_inter = C_in // 2

    key = jax.random.PRNGKey(0)
    k_x, k_wg, k_bg, k_wt, k_bt, k_wp, k_bp = jax.random.split(key, 7)

    x = jax.random.normal(k_x, (B, C_in, H, W), dtype=jnp.float32)

    # Deterministic synthetic 1x1-conv parameters in PyTorch conv layout
    # (C_inter, C_in) == (C_inter, C_in, 1, 1) squeezed.
    scale = 1.0 / jnp.sqrt(jnp.float32(C_in))
    w_theta = jax.random.uniform(k_wt, (C_inter, C_in), jnp.float32, -scale, scale)
    b_theta = jax.random.uniform(k_bt, (C_inter,), jnp.float32, -scale, scale)
    w_phi = jax.random.uniform(k_wp, (C_inter, C_in), jnp.float32, -scale, scale)
    b_phi = jax.random.uniform(k_bp, (C_inter,), jnp.float32, -scale, scale)
    w_g = jax.random.uniform(k_wg, (C_inter, C_in), jnp.float32, -scale, scale)
    b_g = jax.random.uniform(k_bg, (C_inter,), jnp.float32, -scale, scale)

    # tq=tk=128 at this toy shape (HW=256) so the grid is (2, 2, 2): the online-softmax
    # key loop and the resident-KV dynamic key slicing are both exercised.
    z = non_local_block_2d(x, w_theta, b_theta, w_phi, b_phi, w_g, b_g, tq=128, tk=128)
    z = jax.block_until_ready(z)

    z_ref = _reference(x, w_theta, b_theta, w_phi, b_phi, w_g, b_g)
    assert z.shape == (B, C_inter, H, W), z.shape
    max_err = float(jnp.max(jnp.abs(z - z_ref)))
    # Tolerance rationale: both the kernel and the XLA reference run their matmuls at the
    # TPU's default precision (f32 operands fed to the MXU at reduced precision), but they
    # factorize the attention differently (flash online-softmax vs. a full (HW, HW)
    # softmax), so agreement is ~1e-2-level, not f32 epsilon.  The previously observed
    # mismatch (4.8e-3) also included the approximate reciprocal, now removed.
    assert jnp.allclose(z, z_ref, atol=2e-2, rtol=2e-2), \
        f"mismatch vs reference, max_abs_err={max_err}"

    print("KERNEL_OK")
</pallas_src>

<mosaic_0001>
module attributes {stable_mosaic.version = 11 : i64} {
  func.func @_nonlocal_attn_kernel(%arg0: i32, %arg1: i32, %arg2: i32, %arg3: memref<1x4x128xf32, #tpu.memory_space<vmem>>, %arg4: memref<8x4xf32, #tpu.memory_space<vmem>>, %arg5: memref<8x1xf32, #tpu.memory_space<vmem>>, %arg6: memref<1x256x8xf32, #tpu.memory_space<vmem>>, %arg7: memref<1x8x256xf32, #tpu.memory_space<vmem>>, %arg8: memref<1x8x128xf32, #tpu.memory_space<vmem>>, %arg9: memref<1x128xf32, #tpu.memory_space<vmem>>, %arg10: memref<1x128xf32, #tpu.memory_space<vmem>>, %arg11: memref<8x128xf32, #tpu.memory_space<vmem>>, %arg12: memref<8x128xf32, #tpu.memory_space<vmem>>) attributes {dimension_semantics = [#tpu.dimension_semantics<parallel>, #tpu.dimension_semantics<parallel>, #tpu.dimension_semantics<arbitrary>], iteration_bounds = array<i64: 2, 2, 2>, scalar_prefetch = 0 : i64, scratch_operands = 4 : i64, tpu.core_type = #tpu.core_type<tc>, window_params = [{transform_indices = @transform_0, window_bounds = array<i64: 1, 4, 128>}, {pipeline_mode = #tpu.pipeline_mode<synchronous>, transform_indices = @transform_1, window_bounds = array<i64: 8, 4>}, {pipeline_mode = #tpu.pipeline_mode<synchronous>, transform_indices = @transform_2, window_bounds = array<i64: 8, 1>}, {transform_indices = @transform_3, window_bounds = array<i64: 1, 256, 8>}, {transform_indices = @transform_4, window_bounds = array<i64: 1, 8, 256>}, {transform_indices = @transform_5, window_bounds = array<i64: 1, 8, 128>}]} {
    %c0_i32 = arith.constant 0 : i32
    %0 = arith.cmpi eq, %arg2, %c0_i32 : i32
    %1 = arith.extui %0 : i1 to i32
    %c0_i32_0 = arith.constant 0 : i32
    %2 = arith.cmpi ne, %1, %c0_i32_0 : i32
    scf.if %2 {
      %cst_22 = arith.constant 0xFF800000 : f32
      %38 = vector.broadcast %cst_22 : f32 to vector<1x128xf32>
      %c0_23 = arith.constant 0 : index
      %c0_24 = arith.constant 0 : index
      %39 = vector.load %arg9[%c0_23, %c0_24] : memref<1x128xf32, #tpu.memory_space<vmem>>, vector<1x128xf32>
      tpu.vector_store %arg9[%c0_23, %c0_24], %38 {strides = array<i32>} : memref<1x128xf32, #tpu.memory_space<vmem>>, vector<1x128xf32>,
      %cst_25 = arith.constant 0.000000e+00 : f32
      %40 = vector.broadcast %cst_25 : f32 to vector<1x128xf32>
      %c0_26 = arith.constant 0 : index
      %c0_27 = arith.constant 0 : index
      %41 = vector.load %arg10[%c0_26, %c0_27] : memref<1x128xf32, #tpu.memory_space<vmem>>, vector<1x128xf32>
      tpu.vector_store %arg10[%c0_26, %c0_27], %40 {strides = array<i32>} : memref<1x128xf32, #tpu.memory_space<vmem>>, vector<1x128xf32>,
      %cst_28 = arith.constant 0.000000e+00 : f32
      %42 = vector.broadcast %cst_28 : f32 to vector<8x128xf32>
      %c0_29 = arith.constant 0 : index
      %c0_30 = arith.constant 0 : index
      %43 = vector.load %arg11[%c0_29, %c0_30] : memref<8x128xf32, #tpu.memory_space<vmem>>, vector<8x128xf32>
      tpu.vector_store %arg11[%c0_29, %c0_30], %42 {strides = array<i32>} : memref<8x128xf32, #tpu.memory_space<vmem>>, vector<8x128xf32>,
      %c0_31 = arith.constant 0 : index
      %c0_32 = arith.constant 0 : index
      %44 = vector.load %arg4[%c0_31, %c0_32] : memref<8x4xf32, #tpu.memory_space<vmem>>, vector<8x4xf32>
      %c0_33 = arith.constant 0 : index
      %c0_34 = arith.constant 0 : index
      %c0_35 = arith.constant 0 : index
      %45 = vector.load %arg3[%c0_33, %c0_34, %c0_35] : memref<1x4x128xf32, #tpu.memory_space<vmem>>, vector<1x4x128xf32>
      %46 = vector.shape_cast %45 : vector<1x4x128xf32> to vector<4x128xf32>
      %cst_36 = arith.constant dense<0.000000e+00> : vector<8x128xf32>
      %47 = tpu.matmul %44, %46, %cst_36 {dimension_numbers = #tpu.dot_dimension_numbers<[1], [0], [0], [1], [0, 0, 1, 1], [], []>} : vector<8x4xf32>, vector<4x128xf32>, vector<8x128xf32> -> vector<8x128xf32>
      %c0_37 = arith.constant 0 : index
      %c0_38 = arith.constant 0 : index
      %48 = vector.load %arg5[%c0_37, %c0_38] : memref<8x1xf32, #tpu.memory_space<vmem>>, vector<8x1xf32>
      %49 = vector.broadcast %48 : vector<8x1xf32> to vector<8x128xf32>
      %50 = arith.addf %47, %49 : vector<8x128xf32>
      %c0_39 = arith.constant 0 : index
      %c0_40 = arith.constant 0 : index
      %51 = vector.load %arg12[%c0_39, %c0_40] : memref<8x128xf32, #tpu.memory_space<vmem>>, vector<8x128xf32>
      tpu.vector_store %arg12[%c0_39, %c0_40], %50 {strides = array<i32>} : memref<8x128xf32, #tpu.memory_space<vmem>>, vector<8x128xf32>,
    } else {
    }
    %c128_i32 = arith.constant 128 : i32
    %3 = arith.muli %arg2, %c128_i32 : i32
    %4 = tpu.assume_multiple %3, 128 : i32
    %c0 = arith.constant 0 : index
    %5 = arith.index_cast %4 : i32 to index
    %c0_1 = arith.constant 0 : index
    %6 = vector.load %arg6[%c0, %5, %c0_1] : memref<1x256x8xf32, #tpu.memory_space<vmem>>, vector<1x128x8xf32>
    %7 = vector.shape_cast %6 : vector<1x128x8xf32> to vector<128x8xf32>
    %c0_2 = arith.constant 0 : index
    %c0_3 = arith.constant 0 : index
    %8 = arith.index_cast %4 : i32 to index
    %9 = vector.load %arg7[%c0_2, %c0_3, %8] : memref<1x8x256xf32, #tpu.memory_space<vmem>>, vector<1x8x128xf32>
    %10 = vector.shape_cast %9 : vector<1x8x128xf32> to vector<8x128xf32>
    %c0_4 = arith.constant 0 : index
    %c0_5 = arith.constant 0 : index
    %11 = vector.load %arg12[%c0_4, %c0_5] : memref<8x128xf32, #tpu.memory_space<vmem>>, vector<8x128xf32>
    %cst = arith.constant dense<0.000000e+00> : vector<128x128xf32>
    %12 = tpu.matmul %7, %11, %cst {dimension_numbers = #tpu.dot_dimension_numbers<[1], [0], [0], [1], [0, 0, 1, 1], [], []>} : vector<128x8xf32>, vector<8x128xf32>, vector<128x128xf32> -> vector<128x128xf32>
    %c0_6 = arith.constant 0 : index
    %c0_7 = arith.constant 0 : index
    %13 = vector.load %arg9[%c0_6, %c0_7] : memref<1x128xf32, #tpu.memory_space<vmem>>, vector<1x128xf32>
    %cst_8 = arith.constant dense<0xFF800000> : vector<128xf32>
    %14 = vector.multi_reduction <maximumf>, %12, %cst_8 [0] : vector<128x128xf32> to vector<128xf32>
    %15 = vector.shape_cast %14 : vector<128xf32> to vector<1x128xf32>
    %16 = arith.maximumf %13, %15 : vector<1x128xf32>
    %17 = arith.subf %13, %16 : vector<1x128xf32>
    %18 = math.exp %17 : vector<1x128xf32>
    %19 = vector.broadcast %16 : vector<1x128xf32> to vector<128x128xf32>
    %20 = arith.subf %12, %19 : vector<128x128xf32>
    %21 = math.exp %20 : vector<128x128xf32>
    %c0_9 = arith.constant 0 : index
    %c0_10 = arith.constant 0 : index
    %22 = vector.load %arg10[%c0_9, %c0_10] : memref<1x128xf32, #tpu.memory_space<vmem>>, vector<1x128xf32>
    %23 = arith.mulf %18, %22 : vector<1x128xf32>
    %cst_11 = arith.constant dense<0.000000e+00> : vector<128xf32>
    %24 = vector.multi_reduction <add>, %21, %cst_11 [0] : vector<128x128xf32> to vector<128xf32>
    %25 = vector.shape_cast %24 : vector<128xf32> to vector<1x128xf32>
    %26 = arith.addf %23, %25 : vector<1x128xf32>
    %c0_12 = arith.constant 0 : index
    %c0_13 = arith.constant 0 : index
    %27 = vector.load %arg10[%c0_12, %c0_13] : memref<1x128xf32, #tpu.memory_space<vmem>>, vector<1x128xf32>
    tpu.vector_store %arg10[%c0_12, %c0_13], %26 {strides = array<i32>} : memref<1x128xf32, #tpu.memory_space<vmem>>, vector<1x128xf32>,
    %c0_14 = arith.constant 0 : index
    %c0_15 = arith.constant 0 : index
    %28 = vector.load %arg11[%c0_14, %c0_15] : memref<8x128xf32, #tpu.memory_space<vmem>>, vector<8x128xf32>
    %29 = vector.broadcast %18 : vector<1x128xf32> to vector<8x128xf32>
    %30 = arith.mulf %29, %28 : vector<8x128xf32>
    %cst_16 = arith.constant dense<0.000000e+00> : vector<8x128xf32>
    %31 = tpu.matmul %10, %21, %cst_16 {dimension_numbers = #tpu.dot_dimension_numbers<[1], [0], [0], [1], [0, 0, 1, 1], [], []>} : vector<8x128xf32>, vector<128x128xf32>, vector<8x128xf32> -> vector<8x128xf32>
    %32 = arith.addf %30, %31 : vector<8x128xf32>
    %c0_17 = arith.constant 0 : index
    %c0_18 = arith.constant 0 : index
    %33 = vector.load %arg11[%c0_17, %c0_18] : memref<8x128xf32, #tpu.memory_space<vmem>>, vector<8x128xf32>
    tpu.vector_store %arg11[%c0_17, %c0_18], %32 {strides = array<i32>} : memref<8x128xf32, #tpu.memory_space<vmem>>, vector<8x128xf32>,
    %c0_19 = arith.constant 0 : index
    %c0_20 = arith.constant 0 : index
    %34 = vector.load %arg9[%c0_19, %c0_20] : memref<1x128xf32, #tpu.memory_space<vmem>>, vector<1x128xf32>
    tpu.vector_store %arg9[%c0_19, %c0_20], %16 {strides = array<i32>} : memref<1x128xf32, #tpu.memory_space<vmem>>, vector<1x128xf32>,
    %c1_i32 = arith.constant 1 : i32
    %35 = arith.cmpi eq, %arg2, %c1_i32 : i32
    %36 = arith.extui %35 : i1 to i32
    %c0_i32_21 = arith.constant 0 : i32
    %37 = arith.cmpi ne, %36, %c0_i32_21 : i32
    scf.if %37 {
      %c0_22 = arith.constant 0 : index
      %c0_23 = arith.constant 0 : index
      %38 = vector.load %arg11[%c0_22, %c0_23] : memref<8x128xf32, #tpu.memory_space<vmem>>, vector<8x128xf32>
      %c0_24 = arith.constant 0 : index
      %c0_25 = arith.constant 0 : index
      %39 = vector.load %arg10[%c0_24, %c0_25] : memref<1x128xf32, #tpu.memory_space<vmem>>, vector<1x128xf32>
      %40 = vector.broadcast %39 : vector<1x128xf32> to vector<8x128xf32>
      %41 = arith.divf %38, %40 : vector<8x128xf32>
      %c0_26 = arith.constant 0 : index
      %c0_27 = arith.constant 0 : index
      %c0_28 = arith.constant 0 : index
      %42 = vector.load %arg8[%c0_26, %c0_27, %c0_28] : memref<1x8x128xf32, #tpu.memory_space<vmem>>, vector<1x8x128xf32>
      %43 = vector.shape_cast %42 : vector<1x8x128xf32> to vector<8x128xf32>
      %44 = vector.shape_cast %41 : vector<8x128xf32> to vector<1x8x128xf32>
      tpu.vector_store %arg8[%c0_26, %c0_27, %c0_28], %44 {strides = array<i32>} : memref<1x8x128xf32, #tpu.memory_space<vmem>>, vector<1x8x128xf32>,
    } else {
    }
    return
  }
  func.func @transform_0(%arg0: i32, %arg1: i32, %arg2: i32) -> (i32, i32, i32) {
    %c0_i32 = arith.constant 0 : i32
    %c0_i32_0 = arith.constant 0 : i32
    return %arg0, %c0_i32, %arg1 : i32, i32, i32
  }
  func.func @transform_1(%arg0: i32, %arg1: i32, %arg2: i32) -> (i32, i32) {
    %c0_i32 = arith.constant 0 : i32
    %c0_i32_0 = arith.constant 0 : i32
    %c0_i32_1 = arith.constant 0 : i32
    return %c0_i32, %c0_i32_0 : i32, i32
  }
  func.func @transform_2(%arg0: i32, %arg1: i32, %arg2: i32) -> (i32, i32) {
    %c0_i32 = arith.constant 0 : i32
    %c0_i32_0 = arith.constant 0 : i32
    %c0_i32_1 = arith.constant 0 : i32
    return %c0_i32, %c0_i32_0 : i32, i32
  }
  func.func @transform_3(%arg0: i32, %arg1: i32, %arg2: i32) -> (i32, i32, i32) {
    %c0_i32 = arith.constant 0 : i32
    %c0_i32_0 = arith.constant 0 : i32
    %c0_i32_1 = arith.constant 0 : i32
    return %arg0, %c0_i32, %c0_i32_0 : i32, i32, i32
  }
  func.func @transform_4(%arg0: i32, %arg1: i32, %arg2: i32) -> (i32, i32, i32) {
    %c0_i32 = arith.constant 0 : i32
    %c0_i32_0 = arith.constant 0 : i32
    %c0_i32_1 = arith.constant 0 : i32
    return %arg0, %c0_i32, %c0_i32_0 : i32, i32, i32
  }
  func.func @transform_5(%arg0: i32, %arg1: i32, %arg2: i32) -> (i32, i32, i32) {
    %c0_i32 = arith.constant 0 : i32
    %c0_i32_0 = arith.constant 0 : i32
    return %arg0, %c0_i32, %arg1 : i32, i32, i32
  }
}

</mosaic_0001>

<bundles_post_ra>
// kernel: tpu_custom_call.1
= control target key start
LH: loop header
LB: loop body
LE: loop exit
PB: predicated region body
PF: predicated region fallthrough
CT: control target
= control target key end

     0   :  { %10 = vsyncpa [#allocation7], 0  ;;  %s1343_s0 = inlined_call_operand.vmem [shape: f32[2,4,256], index: 0, kind: input, shape index: {}]   ;;  %s1344_s1 = inlined_call_operand.vmem [shape: f32[8,4], index: 1, kind: input, shape index: {}]   ;;  %s1345_s2 = inlined_call_operand.vmem [shape: f32[8,1], index: 2, kind: input, shape index: {}]   ;;  %s1346_s3 = inlined_call_operand.vmem [shape: f32[2,256,8], index: 3, kind: input, shape index: {}]   ;;  %s1347_s4 = inlined_call_operand.vmem [shape: f32[2,8,256], index: 4, kind: input, shape index: {}]   ;;  %s1348_s5 = inlined_call_operand.hbm [shape: f32[2,8,256], index: 5, kind: output, shape index: {}]  }
   0x1   :  { %12 = vsyncpa [#allocation7 + $0x1], 0  ;;  %s1078_s18 = smov 0   ;;  %s1080_s19 = smov 0  }
   0x2   :  { %s1082_s20 = smov 0   ;;  %s1084_s21 = smov 0  }
   0x3   :  { %s1086_s22 = smov 0   ;;  %s1088_s23 = smov 0  }
   0x4   :  { %s1090_s24 = smov 0   ;;  %s1092_s25 = smov 0  }
   0x5   :  { %s1094_s26 = smov 0   ;;  %s1096_s27 = smov 0  }
   0x6 LB: > { %1357 = sst [smem:[#allocation9_spill]] %s1015_s20  ;;  %s762_s28 = sadd.s32 4294967295, %s1043_s27   ;;  %s1043_s27 = sphi %s1096_s27, %s18_s27   ;;  %s1039_s26 = sphi %s1094_s26, %s1377_s26   ;;  %s1035_s25 = sphi %s1092_s25, %s1376_s25   ;;  %s1031_s24 = sphi %s1090_s24, %s1375_s24   ;;  %s1027_s23 = sphi %s1088_s23, %s1374_s23   ;;  %s1023_s22 = sphi %s1086_s22, %s1373_s22   ;;  %s1019_s21 = sphi %s1084_s21, %s1372_s21   ;;  %s1015_s20 = sphi %s1082_s20, %s1371_s20   ;;  %s1011_s19 = sphi %s1080_s19, %s1379_s19   ;;  %s1007_s18 = sphi %s1078_s18, %s1378_s18  }
   0x7   : > { %1358 = sst [smem:[#allocation10_spill]] %s1031_s24  ;;  %s763_s29 = sadd.s32 4294967294, %s1043_s27  }
   0x8   : > { %1359 = sst [smem:[#allocation11_spill]] %s1035_s25  ;;  %s30_s30 = sadd.s32 1, %s1031_s24 }
   0x9   : > { %1360 = sst [smem:[#allocation12_spill]] %s1039_s26  ;;  %p31_p0 = scmp.ge.s32.totalorder %s30_s30, 2 }
   0xa   : > { %s33_s6 = sadd.s32 1, %s1035_s25  ;;  %s37_s7 = sadd.s32 1, %s1039_s26 }
   0xb   : > { %p178_p1 = scmp.ne.s32.totalorder %s1015_s20, %s1011_s19  ;;  %s1381_s30 = smov (%p31_p0, %s30_s30), 0 }
   0xc   : > { %1361 = sst [smem:[#allocation13_spill]] %s1381_s30  ;;  %s1383_s6 = smov (!%p31_p0, %s33_s6), %s1035_s25 }
   0xd   : > { %p179_p2 = scmp.eq.s32.totalorder %s762_s28, 7  ;;  %p184_p3 = scmp.ne.s32.totalorder %s1011_s19, %s1007_s18 }
   0xe   : > { %p35_p4 = scmp.ge.s32.totalorder %s1383_s6, 2  ;;  %p185_p5 = scmp.eq.s32.totalorder %s763_s29, 7 }
   0xf   : > { %p1140_p6 = por %p179_p2, %p178_p1  ;;  %p766_p8 = scmp.ge.s32.totalorder %s1043_s27, 1 }
  0x10   : > { %s1385_s6 = smov (%p35_p4, %s1383_s6), 0  ;;  %s1387_s7 = smov (!%p35_p4, %s37_s7), %s1039_s26 }
  0x11   : > { %1363 = sst [smem:[#allocation14_spill]] %s1385_s6  ;;  %p1147_p7 = por %p185_p5, %p184_p3 }
  0x12   : > { %p39_p9 = scmp.ge.s32.totalorder %s1387_s7, 2  ;;  %p236_p10 = scmp.lt.s32.totalorder %s1043_s27, 9 }
  0x13   : > { %s1364_s9 = scalar_select %p1147_p7, 1, 0 }
  0x14   : > { %s164_s10 = ssub.s32 %s1035_s25, %s1385_s6  ;;  %s1389_s7 = smov (%p39_p9, %s1387_s7), 0 }
  0x15   : > { %1365 = sst [smem:[#allocation15_spill]] %s1364_s9  ;;  %p237_p11 = pnand %p766_p8, %p236_p10 }
  0x16   : > { %1366 = sst [smem:[#allocation16_spill]] %s1389_s7  ;;  %s163_s11 = ssub.s32 %s1039_s26, %s1389_s7 }
  0x17   : > { %s165_s12 = sor.u32 %s164_s10, %s163_s11  ;;  %s168_s13 = sadd.s32 1, %s1015_s20 }
  0x18   : > { %p166_p12 = scmp.eq.s32.totalorder %s165_s12, 0  ;;  %240 = sbr.rel (%p237_p11) target bundleno = 587 (0x24b), region = 40 }
  0x19   : > { %s1354_s15 = sand.u32 (!%p237_p11), 1, %s1011_s19   ;;  %p277_p13 = scmp.lt.s32.totalorder (!%p237_p11), %s1027_s23, 1 }
  0x1a   : > { %s1161_s14 = scalar_select %p166_p12, %s1015_s20, %s168_s13  }
  0x1b   : > { %s1167_s16 = sshll.u32 (!%p237_p11), %s1354_s15, 3  ;;  %p279_p0 = scmp.lt.s32.totalorder (!%p237_p11), %s1023_s22, 1 }
  0x1c   : > { %1367 = sst [smem:[#allocation17_spill]] %s1161_s14  ;;  %s276_s9 = scalar_lea.vmem (!%p237_p11), [#allocation6], %s1167_s16 }
  0x1d   : > { %s278_s17 = scalar_select %p277_p13, %s1027_s23, 1 }
  0x1e   : > { %s280_s28 = scalar_select %p279_p0, %s1023_s22, 1 }
  0x1f   : > { %s768_s29 = sshll.u32 %s278_s17, 1  ;;  %s801_s10 = sshll.u32 %s278_s17, 8 }
  0x20   : > { %s282_s11 = sadd.s32 %s768_s29, %s280_s28  ;;  %s1175_s7 = scalar_lea.vmem %s1346_s3, %s801_s10 }
  0x21   : > { %s769_s6 = sshll.u32 %s282_s11, 2  ;;  %s802_s30 = sshll.u32 %s278_s17, 4 }
  0x22   : > { %s284_s24 = scalar_lea.vmem %s1343_s0, %s769_s6  ;;  %s1183_s20 = scalar_lea.vmem %s1347_s4, %s802_s30 }
  0x23   : > { %p774_p1 = scmp.ne.s32.totalorder %s1019_s21, 0 }
  0x25   : > { %298 = sbr.rel (%p774_p1) target bundleno = 173 (0xad), region = 44 }
  0x2a   : > { %v303_v0 = vld [vmem:[%s284_s24] sm:$0xf]  ;;  %vm314_vm0 = vcmask 1043456   ;;  %v1045_v2 = vmov -inf   ;;  %vm310_vm1 = vcmask 31744   ;;  %v1046_v4 = vmov 0.0  }
  0x2b   : > { %v302_v1 = vld [vmem:[%s1344_s1] sm:$0xff]  ;;  %299 = vst [vmem:[#allocation2] sm:$0x1] %v1045_v2  ;;  %775 = vmatpush.msk.msra.mxu0 %vm314_vm0, %v303_v0  ;;  %v1047_v5 = vmov 0  }
  0x2c   : > { %v304_v3 = vld [vmem:[%s1345_s2] sm:$0xff]  ;;  %300 = vst [vmem:[#allocation3] sm:$0x1] %v1046_v4  ;;  %776 = vmatmul.msk.f32.vlgmr.msra.gmra.mxu0 %vm310_vm1, %v302_v1  ;;  %895 = vset.pattern.permute.xlu0 %v1047_v5 }
  0x2d   : > { %301 = vst [vmem:[#allocation4] sm:$0xff] %v1046_v4  ;;  %307 = vperm.xlu0 %895, %v304_v3  }
  0x9f   : > { %v308_v6 = vpop.permute.xlu0 %307 }
  0xa9   : > { %v335_v7 = vpop.f32.mrf.mxu0 }
  0xaa   : > { %v336_v8 = vadd.f32 %v335_v7, %v308_v6 }
  0xac   : > { %338 = vst [vmem:[#allocation5] sm:$0xff] %v336_v8 }
  0xad PF: > { %s777_s24 = sshll.u32 %s1019_s21, 7  ;;  %vm363_vm2 = vcmask 64512   ;;  %v1255_v62 = vld [vmem:[#allocation2] sm:$0x1]  ;;  %p795_p2 = scmp.ne.s32.totalorder %s1019_s21, 1 }
  0xae   : > { %s1197_s30 = scalar_lea.vmem %s1175_s7, %s777_s24  ;;  %s357_s6 = sshra.s32 %s777_s24, 7 }
  0xaf   : > { %v341_v10 = vld [vmem:[%s1197_s30] sm:$0xff]  ;;  %v347_v11 = vld [vmem:[%s1197_s30 + $0x30] sm:$0xff]  ;;  %v342_v13 = vld [vmem:[%s1197_s30 + $0x8] sm:$0xff]  ;;  %s778_s7 = sshll.u32 %s357_s6, 3 }
  0xb0   : > { %v353_v12 = vld [vmem:[%s1197_s30 + $0x60] sm:$0xff]  ;;  %v348_v14 = vld [vmem:[%s1197_s30 + $0x38] sm:$0xff]  ;;  %v354_v15 = vld [vmem:[%s1197_s30 + $0x68] sm:$0xff]  ;;  %s360_s14 = scalar_lea.vmem %s1183_s20, %s778_s7 }
  0xb1   : > { %v343_v16 = vld [vmem:[%s1197_s30 + $0x10] sm:$0xff]  ;;  %v349_v17 = vld [vmem:[%s1197_s30 + $0x40] sm:$0xff]  ;;  %v344_v19 = vld [vmem:[%s1197_s30 + $0x18] sm:$0xff] }
  0xb2   : > { %v355_v18 = vld [vmem:[%s1197_s30 + $0x70] sm:$0xff]  ;;  %v350_v20 = vld [vmem:[%s1197_s30 + $0x48] sm:$0xff]  ;;  %v356_v21 = vld [vmem:[%s1197_s30 + $0x78] sm:$0xff] }
  0xb3   : > { %v362_v9 = vld [vmem:[#allocation5] sm:$0xff]  ;;  %v345_v22 = vld [vmem:[%s1197_s30 + $0x20] sm:$0xff]  ;;  %v352_v25 = vld [vmem:[%s1197_s30 + $0x58] sm:$0xff] }
  0xb4   : > { %427 = vmatpush.msra.mxu0 %v362_v9  ;;  %803 = vmatpush.msra.mxu2 %v362_v9  ;;  %v351_v23 = vld [vmem:[%s1197_s30 + $0x50] sm:$0xff]  ;;  %v346_v24 = vld [vmem:[%s1197_s30 + $0x28] sm:$0xff] }
  0xb5   : > { %804 = vmatpush.msra.mxu3 %v362_v9  ;;  %779 = vmatmul.msk.f32.vlgmr.msra.gmra.mxu0 %vm363_vm2, %v341_v10 }
  0xb6   : > { %785 = vmatmul.msk.f32.vlgmr.msra.gmra.mxu2 %vm363_vm2, %v347_v11  ;;  %791 = vmatmul.msk.f32.vlgmr.msra.gmra.mxu3 %vm363_vm2, %v353_v12 }
  0xbd   : > { %780 = vmatmul.msk.f32.gmra.mxu0 %vm363_vm2, %v342_v13 }
  0xbe   : > { %786 = vmatmul.msk.f32.gmra.mxu2 %vm363_vm2, %v348_v14  ;;  %792 = vmatmul.msk.f32.gmra.mxu3 %vm363_vm2, %v354_v15 }
  0xc5   : > { %781 = vmatmul.msk.f32.gmra.mxu0 %vm363_vm2, %v343_v16 }
  0xc6   : > { %787 = vmatmul.msk.f32.gmra.mxu2 %vm363_vm2, %v349_v17  ;;  %793 = vmatmul.msk.f32.gmra.mxu3 %vm363_vm2, %v355_v18 }
  0xcd   : > { %782 = vmatmul.msk.f32.gmra.mxu0 %vm363_vm2, %v344_v19 }
  0xce   : > { %788 = vmatmul.msk.f32.gmra.mxu2 %vm363_vm2, %v350_v20  ;;  %794 = vmatmul.msk.f32.gmra.mxu3 %vm363_vm2, %v356_v21 }
  0xd5   : > { %783 = vmatmul.msk.f32.gmra.mxu0 %vm363_vm2, %v345_v22 }
  0xd6   : > { %789 = vmatmul.msk.f32.gmra.mxu2 %vm363_vm2, %v351_v23 }
  0xdd   : > { %784 = vmatmul.msk.f32.gmra.mxu0 %vm363_vm2, %v346_v24 }
  0xde   : > { %790 = vmatmul.msk.f32.gmra.mxu2 %vm363_vm2, %v352_v25 }
 0x132   : > { %v1231_v26 = vpop.f32.mrf.mxu0 }
 0x139   : > { %v1233_v27 = vpop.f32.mrf.mxu2  ;;  %v465_v31 = vpop.f32.mrf.mxu3 }
 0x13a   : > { %v1235_v28 = vpop.f32.mrf.mxu0 }
 0x141   : > { %v1237_v29 = vpop.f32.mrf.mxu2  ;;  %v468_v34 = vpop.f32.mrf.mxu3 }
 0x142   : > { %v1239_v30 = vpop.f32.mrf.mxu0 }
 0x143   : > { %v480_v42 = vmax.f32 %v1239_v30, %v1233_v27 }
 0x149   : > { %v453_v32 = vpop.f32.mrf.mxu2  ;;  %v471_v37 = vpop.f32.mrf.mxu3 }
 0x14a   : > { %v1241_v33 = vpop.f32.mrf.mxu0 }
 0x14b   : > { %v481_v44 = vmax.f32 %v1241_v33, %v1237_v29 }
 0x151   : > { %v456_v35 = vpop.f32.mrf.mxu2  ;;  %v474_v48 = vpop.f32.mrf.mxu3 }
 0x152   : > { %v1243_v36 = vpop.f32.mrf.mxu0 }
 0x153   : > { %v478_v40 = vmax.f32 %v1231_v26, %v1243_v36 }
 0x155   : > { %v482_v45 = vmax.f32 %v478_v40, %v453_v32 }
 0x157   : > { %v486_v51 = vmax.f32 %v482_v45, %v465_v31 }
 0x159   : > { %v459_v38 = vpop.f32.mrf.mxu2 }
 0x15a   : > { %v1245_v39 = vpop.f32.mrf.mxu0  ;;  %v484_v46 = vmax.f32 %v480_v42, %v459_v38 }
 0x15b   : > { %v479_v41 = vmax.f32 %v1235_v28, %v1245_v39 }
 0x15c   : > { %v488_v52 = vmax.f32 %v484_v46, %v471_v37 }
 0x15d   : > { %v483_v43 = vmax.f32 %v479_v41, %v456_v35 }
 0x15f   : > { %v487_v49 = vmax.f32 %v483_v43, %v468_v34 }
 0x161   : > { %v462_v47 = vpop.f32.mrf.mxu2  ;;  %v490_v54 = vmax.f32 %v486_v51, %v487_v49 }
 0x162   : > { %v485_v50 = vmax.f32 %v481_v44, %v462_v47 }
 0x164   : > { %v489_v53 = vmax.f32 %v485_v50, %v474_v48 }
 0x166   : > { %v491_v55 = vmax.f32 %v488_v52, %v489_v53 }
 0x168   : > { %v492_v56 = vmax.f32 %v490_v54, %v491_v55 }
 0x16a   : > { %v493_v57 = vrot.slane %v492_v56, 4 }
 0x16c   : > { %v494_v58 = vmax.f32 %v492_v56, %v493_v57  ;;  %v361_v57 = vld [vmem:[%s360_s14] sm:$0xff] }
 0x16e   : > { %v495_v59 = vrot.slane %v494_v58, 2 }
 0x170   : > { %v496_v60 = vmax.f32 %v494_v58, %v495_v59 }
 0x172   : > { %v497_v61 = vrot.slane %v496_v60, 1 }
 0x174   : > { %v498_v63 = vmax.f32 %v496_v60, %v497_v61 }
 0x176   : > { %v1258_v0 = vmax.f32 %v1255_v62, %v498_v63 }
 0x178   : > { %v504_v1 = vperm.slane %v1258_v0, 0  ;;  %606 = vst [vmem:[#allocation2] sm:$0x1] %v1258_v0 }
 0x17a   : > { %v521_v2 = vsub.f32 %v474_v48, %v504_v1  ;;  %v520_v3 = vsub.f32 %v471_v37, %v504_v1  ;;  %v519_v4 = vsub.f32 %v468_v34, %v504_v1  ;;  %v518_v7 = vsub.f32 %v465_v31, %v504_v1 }
 0x17b   : > { %v517_v9 = vsub.f32 %v462_v47, %v504_v1  ;;  %v516_v11 = vsub.f32 %v459_v38, %v504_v1  ;;  %v515_v13 = vsub.f32 %v456_v35, %v504_v1  ;;  %v514_v14 = vsub.f32 %v453_v32, %v504_v1 }
 0x17c   : > { %v552_v5 = vmul.f32 1.442695, %v521_v2  ;;  %v550_v6 = vmul.f32 1.442695, %v520_v3  ;;  %v548_v8 = vmul.f32 1.442695, %v519_v4  ;;  %v507_v17 = vsub.f32 %v1235_v28, %v504_v1 }
 0x17d   : > { %v546_v10 = vmul.f32 1.442695, %v518_v7  ;;  %v544_v12 = vmul.f32 1.442695, %v517_v9  ;;  %v542_v16 = vmul.f32 1.442695, %v516_v11  ;;  %v506_v18 = vsub.f32 %v1231_v26, %v504_v1 }
 0x17e   : > { %896 = vpow2.f32 %v552_v5  ;;  %v540_v20 = vmul.f32 1.442695, %v515_v13  ;;  %v513_v21 = vsub.f32 %v1237_v29, %v504_v1  ;;  %v538_v22 = vmul.f32 1.442695, %v514_v14  ;;  %v554_v11 = vld [vmem:[#allocation3] sm:$0x1] }
 0x17f   : > { %898 = vpow2.f32 %v550_v6  ;;  %v508_v23 = vsub.f32 %v1239_v30, %v504_v1  ;;  %v512_v25 = vsub.f32 %v1233_v27, %v504_v1  ;;  %v524_v28 = vmul.f32 1.442695, %v507_v17 }
 0x180   : > { %900 = vpow2.f32 %v548_v8  ;;  %v509_v26 = vsub.f32 %v1241_v33, %v504_v1  ;;  %v522_v31 = vmul.f32 1.442695, %v506_v18  ;;  %v536_v34 = vmul.f32 1.442695, %v513_v21 }
 0x181   : > { %902 = vpow2.f32 %v546_v10  ;;  %v511_v29 = vsub.f32 %v1245_v39, %v504_v1  ;;  %v510_v30 = vsub.f32 %v1243_v36, %v504_v1  ;;  %v526_v35 = vmul.f32 1.442695, %v508_v23 }
 0x182   : > { %904 = vpow2.f32 %v544_v12  ;;  %v534_v38 = vmul.f32 1.442695, %v512_v25  ;;  %v528_v27 = vmul.f32 1.442695, %v509_v26  ;;  %v500_v1 = vsub.f32 %v1255_v62, %v1258_v0  ;;  %v579_v0 = vld [vmem:[#allocation4] sm:$0xff] }
 0x183   : > { %906 = vpow2.f32 %v542_v16  ;;  %v532_v33 = vmul.f32 1.442695, %v511_v29  ;;  %v530_v41 = vmul.f32 1.442695, %v510_v30 }
 0x184   : > { %v1262_v15 = vpop.eup %896  ;;  %908 = vpow2.f32 %v540_v20  ;;  %v501_v4 = vmul.f32 1.442695, %v500_v1 }
 0x185   : > { %584 = vmatpush.msra.mxu1 %v1262_v15  ;;  %v1267_v19 = vpop.eup %898  ;;  %910 = vpow2.f32 %v538_v22 }
 0x186   : > { %v1272_v24 = vpop.eup %900  ;;  %912 = vpow2.f32 %v524_v28 }
 0x187   : > { %585 = vmatpush.msra.mxu1 %v1267_v19  ;;  %v903_v32 = vpop.eup %902  ;;  %914 = vpow2.f32 %v522_v31 }
 0x188   : > { %v905_v37 = vpop.eup %904  ;;  %916 = vpow2.f32 %v536_v34 }
 0x189   : > { %586 = vmatpush.msra.mxu1 %v1272_v24  ;;  %v907_v40 = vpop.eup %906  ;;  %918 = vpow2.f32 %v526_v35 }
 0x18a   : > { %v909_v42 = vpop.eup %908  ;;  %920 = vpow2.f32 %v534_v38 }
 0x18b   : > { %587 = vmatpush.msra.mxu1 %v903_v32  ;;  %v911_v39 = vpop.eup %910  ;;  %922 = vpow2.f32 %v528_v27 }
 0x18c   : > { %v913_v36 = vpop.eup %912  ;;  %924 = vpow2.f32 %v532_v33 }
 0x18d   : > { %588 = vmatpush.msra.mxu1 %v905_v37  ;;  %v915_v43 = vpop.eup %914  ;;  %926 = vpow2.f32 %v530_v41 }
 0x18e   : > { %v917_v44 = vpop.eup %916  ;;  %v556_v45 = vadd.f32 %v915_v43, %v913_v36  ;;  %928 = vpow2.f32 %v501_v4 }
 0x18f   : > { %589 = vmatpush.msra.mxu1 %v907_v40  ;;  %v919_v46 = vpop.eup %918 }
 0x190   : > { %v921_v47 = vpop.eup %920  ;;  %v557_v48 = vadd.f32 %v919_v46, %v556_v45 }
 0x191   : > { %590 = vmatpush.msra.mxu1 %v909_v42  ;;  %v923_v49 = vpop.eup %922 }
 0x192   : > { %v925_v50 = vpop.eup %924  ;;  %v558_v51 = vadd.f32 %v923_v49, %v557_v48 }
 0x193   : > { %591 = vmatpush.msra.mxu1 %v911_v39  ;;  %v927_v52 = vpop.eup %926 }
 0x194   : > { %v559_v53 = vadd.f32 %v927_v52, %v558_v51  ;;  %v929_v10 = vpop.eup %928 }
 0x195   : > { %592 = vmatpush.msra.mxu1 %v917_v44  ;;  %v555_v14 = vmul.f32 %v929_v10, %v554_v11  ;;  %v581_v62 = vperm.slane %v929_v10, 0 }
 0x196   : > { %v560_v54 = vadd.f32 %v925_v50, %v559_v53 }
 0x197   : > { %593 = vmatpush.msra.mxu1 %v921_v47  ;;  %v583_v17 = vmul.f32 %v581_v62, %v579_v0 }
 0x198   : > { %v561_v55 = vadd.f32 %v921_v47, %v560_v54 }
 0x199   : > { %594 = vmatpush.msra.mxu1 %v925_v50 }
 0x19a   : > { %v562_v56 = vadd.f32 %v917_v44, %v561_v55 }
 0x19b   : > { %595 = vmatpush.msra.mxu1 %v927_v52 }
 0x19c   : > { %v563_v58 = vadd.f32 %v911_v39, %v562_v56 }
 0x19d   : > { %596 = vmatpush.msra.mxu1 %v923_v49 }
 0x19e   : > { %v564_v59 = vadd.f32 %v909_v42, %v563_v58 }
 0x19f   : > { %597 = vmatpush.msra.mxu1 %v919_v46 }
 0x1a0   : > { %v565_v60 = vadd.f32 %v907_v40, %v564_v59 }
 0x1a1   : > { %598 = vmatpush.msra.mxu1 %v913_v36 }
 0x1a2   : > { %v566_v61 = vadd.f32 %v905_v37, %v565_v60 }
 0x1a3   : > { %599 = vmatpush.msra.mxu1 %v915_v43 }
 0x1a4   : > { %600 = vmatmul.f32.vlgmr.msra.gmra.mxu1 %v361_v57  ;;  %v567_v63 = vadd.f32 %v903_v32, %v566_v61 }
 0x1a6   : > { %v568_v2 = vadd.f32 %v1272_v24, %v567_v63 }
 0x1a8   : > { %v569_v3 = vadd.f32 %v1267_v19, %v568_v2 }
 0x1aa   : > { %v570_v5 = vadd.f32 %v1262_v15, %v569_v3 }
 0x1ac   : > { %v571_v6 = vrot.slane %v570_v5, 4 }
 0x1ae   : > { %v572_v7 = vadd.f32 %v571_v6, %v570_v5 }
 0x1b0   : > { %v573_v8 = vrot.slane %v572_v7, 2 }
 0x1b2   : > { %v574_v9 = vadd.f32 %v573_v8, %v572_v7 }
 0x1b4   : > { %v575_v12 = vrot.slane %v574_v9, 1 }
 0x1b6   : > { %v576_v13 = vadd.f32 %v575_v12, %v574_v9 }
 0x1b8   : > { %v577_v16 = vadd.f32 %v576_v13, %v555_v14 }
 0x1ba   : > { %578 = vst [vmem:[#allocation3] sm:$0x1] %v577_v16 }
 0x220   : > { %610 = sbr.rel (%p795_p2) target bundleno = 570 (0x23a), region = 48 }
 0x221   : > { %v601_v18 = vpop.f32.mrf.mxu1 }
 0x222   : > { %v604_v19 = vadd.f32 %v601_v18, %v583_v17 }
 0x224   : > { %605 = vst [vmem:[#allocation4] sm:$0xff] %v604_v19 }
 0x225   : > { %v930_v15 = vld [vmem:[#allocation3] ss:$0 sm:$0xff] }
 0x226   : > { %931 = vrcp.f32 %v930_v15  ;;  %v627_v22 = vand.u32 2147483648, %v930_v15  ;;  %vm621_vm3 = vweird.f32 %v930_v15  ;;  %v625_v24 = vand.u32 2147483647, %v930_v15 }
 0x228   : > { %v628_v28 = vor.u32 1.1754944e-38, %v627_v22  ;;  %vm626_vm6 = vcmp.eq.f32.partialorder %v625_v24, 8.507059e+37 }
 0x22b   : > { %v611_v31 = vld [vmem:[#allocation4] sm:$0xff] }
 0x22c   : > { %v932_v20 = vpop.eup %931 }
 0x22d   : > { %v617_v21 = vmul.f32 %v932_v20, %v930_v15  ;;  %vm622_vm4 = vweird.f32 %v932_v20 }
 0x22e   : > { %vm623_vm5 = vmor %vm621_vm3, %vm622_vm4 }
 0x22f   : > { %v618_v23 = vsub.f32 1.0, %v617_v21 }
 0x231   : > { %v619_v25 = vmul.f32 %v932_v20, %v618_v23 }
 0x233   : > { %v620_v26 = vadd.f32 %v932_v20, %v619_v25 }
 0x235   : > { %v624_v32 = vsel %vm623_vm5, %v932_v20, %v620_v26 }
 0x236   : > { %v629_v34 = vsel %vm626_vm6, %v628_v28, %v624_v32 }
 0x237   : > { %v630_v29 = vmul.f32 %v629_v34, %v611_v31 }
 0x239   : > { %631 = vst [vmem:[%s276_s9] sm:$0xff] %v630_v29 }
 0x23a PF: > { %s797_s20 = sshll.u32 %s1027_s23, 1  ;;  %s647_s15 = sshll.u32 %s276_s9, 4  ;;  %s648_s15 = int_to_ptr.vmem [resolvable:$true] %s647_s15 }
 0x23b   : > { %s643_s21 = sadd.s32 %s1023_s22, %s797_s20  ;;  %s1368_s28 = sand.u32 1, %s1011_s19  }
 0x23c   : > { %s798_s17 = sshll.u32 %s643_s21, 3  ;;  %s633_s29 = scalar_lea.sflag [#allocation7], %s1368_s28 }
 0x23d   : > { %s645_s12 = scalar_lea.hbm %s1348_s5, %s798_s17  ;;  %s953_s9 = scalar_lea.hbm %s1348_s5, 32 }
 0x23e   : > { %s649_s13 = sshll.u32 %s645_s12, 4  ;;  %s650_s13 = int_to_ptr.hbm [resolvable:$true] %s649_s13 }
 0x23f   : > { %s947_s25 = sshra.s32 %s650_s13, 4  ;;  %s948_s25 = int_to_ptr.hbm [resolvable:$true] %s947_s25 }
 0x240   : > { %s949_s26 = scalar_lea.hbm %s948_s25, 8  ;;  %p954_p8 = scmp.lt.s32.totalorder %s948_s25, %s1348_s5 }
 0x241   : > { %p950_p3 = scmp.ne.s32.totalorder %s948_s25, %s949_s26  ;;  %p955_p9 = scmp.lt.s32.totalorder %s953_s9, %s949_s26 }
 0x243   : > { %p951_p4 = pnand %p950_p3, %p1140_p6  ;;  %p956_p10 = por %p955_p9, %p954_p8 }
 0x245   : > { %p952_p5 = pneg %p951_p4 }
 0x247   : > { %p957_p11 = pnand %p956_p10, %p952_p5 }
 0x249   : > { %960 = shalt.err (!%p957_p11)
}
 0x24a   : > { %805 = dma.vmem_to_hbm [thread:$0]  (%p1140_p6), %s648_s15, 128, %s650_s13, %s633_s29  }
 0x24b PF: > { %p811_p12 = scmp.ge.s32.totalorder %s1043_s27, 2  ;;  %s661_s6 = sand.u32 1, %s1007_s18  }
 0x24c   : > { %s662_s7 = scalar_lea.sflag [#allocation7], %s661_s6 }
 0x24d   : > { %p808_p13 = pnand %p811_p12, %p1147_p7 }
 0x24f   : > { %p809_p0 = pneg %p808_p13 }
 0x251   : > { %1002 = dma.done.wait (%p809_p0), %s662_s7, 128  }
 0x252   : > { %1004 = vsyncadd (%p809_p0), %s662_s7, 4294967168  ;;  %s18_s27 = sadd.s32 1, %s1043_s27   ;;  %s1370_s14 = sld [smem:[#allocation9_spill]] }
 0x253   : > { %p15_p1 = scmp.ge.s32.totalorder %s18_s27, 10   ;;  %s1371_s20 = sld [smem:[#allocation17_spill]] }
 0x254   : > { %s1372_s21 = sld [smem:[#allocation10_spill]]  ;;  %s1378_s18 = smov %s1011_s19 }
 0x255   : > { %s1373_s22 = sld [smem:[#allocation11_spill]]  ;;  %17 = sbr.rel (!%p15_p1) target bundleno = 6 (0x6), region = 91 }
 0x256   : > { %s1374_s23 = sld [smem:[#allocation12_spill]] }
 0x257   : > { %s1375_s24 = sld [smem:[#allocation13_spill]] }
 0x258   : > { %s1376_s25 = sld [smem:[#allocation14_spill]]  ;;  %s1379_s19 = smov %s1370_s14 }
 0x259   : > { %s1377_s26 = sld [smem:[#allocation16_spill]] }
 0x25a   :  { %668 = vsyncpa [#allocation7], 1 }
 0x25b   :  { %670 = vsyncpa [#allocation7 + $0x1], 1 }

</bundles_post_ra>
